<compile_context>
chip_gen: v6e
topology: v6e:2x2x1
jax: 0.10.0
libtpu: 0.0.40
codegen_flags: <defaults>
</compile_context>

<pallas_src>
import math
import numpy as np
import jax
import jax.numpy as jnp
from jax.experimental import pallas as pl
from jax.experimental.pallas import tpu as pltpu

NUM_CLASSES = 10
PADDED_CLASSES = 128      # lane-dense padded logits width (unmasked vst)
SUBLANE = 8               # f32 sublane granule
TM_MAX = 512              # ~85% of HBM roofline; VMEM-safe on v7x (64 MiB phys)
VMEM_TILE_BUDGET = 48 << 20


def _round_up(v, m):
    return ((v + m - 1) // m) * m


def _make_diffusion_kernel(a_coef, b_coef):
    """Bake q_sample coefficients in as compile-time constants (pre-folded).

    x_t = a*(2x - 1) + b*noise  ==  (2a)*x + b*noise + (-a)
    """
    two_a = float(2.0 * a_coef)
    neg_a = float(-a_coef)
    b_c = float(b_coef)

    def kernel(x_ref, noise_ref, w_ref, xt_ref, logits_ref):
        # Elementwise q_sample in f32 (VPU, v5e-friendly); bf16 only at MXU input.
        x_t = two_a * x_ref[...] + b_c * noise_ref[...] + neg_a
        xt_ref[...] = x_t
        logits_ref[...] = jnp.dot(
            x_t.astype(jnp.bfloat16), w_ref[...],
            preferred_element_type=jnp.float32)

    return kernel


def _vmem_need_bytes(tm, f):
    return (2 * 2 * tm * f * 4              # x, noise tiles, double-buffered
            + 2 * tm * f * 4                # x_t output tile, double-buffered
            + 2 * f * PADDED_CLASSES * 2    # bf16 weight (2 buffers reserved)
            + 2 * tm * PADDED_CLASSES * 4)  # logits tile, double-buffered


def _pick_tile(b, f):
    """Batch tile size + number of grid steps; no wrapper-side padding ever."""
    if b <= SUBLANE:
        # Single tile whose block equals the full batch dim -> valid even when
        # b is not a multiple of 8, and nothing is padded or masked.
        tm = b
    else:
        # At least 2 tiles so dimension_semantics=('parallel',) can shard the
        # grid across both TensorCores on v7x; costs only ~0.35us per extra
        # grid step on single-TC chips.
        tm = min(_round_up(-(-b // 2), SUBLANE), TM_MAX)
        # Shrink if the chosen tile would blow the VMEM budget.
        while tm > SUBLANE and _vmem_need_bytes(tm, f) > VMEM_TILE_BUDGET:
            tm = max(SUBLANE, _round_up(tm // 2, SUBLANE))
    n_tiles = -(-b // tm)
    return tm, n_tiles


def diffusion_forward(x_nchw, noise_nchw, a_coef, b_coef, w_bf16, bias_real):
    """x, noise: (B, C, H, W) f32; w_bf16: (F, 128) bf16; bias_real: (10,) f32."""
    B, C, H, W = x_nchw.shape
    F = C * H * W
    x = x_nchw.reshape(B, F).astype(jnp.float32)
    noise = noise_nchw.reshape(B, F).astype(jnp.float32)

    TM, n_tiles = _pick_tile(B, F)
    kernel = _make_diffusion_kernel(a_coef, b_coef)

    cost = pl.CostEstimate(
        flops=2 * B * F * PADDED_CLASSES,
        transcendentals=0,
        bytes_accessed=(F * PADDED_CLASSES * 2      # bf16 weight (DMA'd once)
                        + 3 * B * F * 4             # x, noise, x_t
                        + B * PADDED_CLASSES * 4))  # logits

    # Explicit scoped-VMEM limit: required on v5e (16 MiB default) for big tiles,
    # harmless elsewhere; capped at 56 MiB so it never exceeds v7x's 64 MiB.
    vmem_limit = int(min(max(2 * _vmem_need_bytes(TM, F), 32 << 20), 56 << 20))

    xt, logits = pl.pallas_call(
        kernel,
        out_shape=(
            jax.ShapeDtypeStruct((B, F), jnp.float32),
            jax.ShapeDtypeStruct((B, PADDED_CLASSES), jnp.float32),
        ),
        grid_spec=pl.GridSpec(
            grid=(n_tiles,),
            in_specs=[
                pl.BlockSpec((TM, F), lambda i: (i, 0)),              # x tile
                pl.BlockSpec((TM, F), lambda i: (i, 0)),              # noise tile
                pl.BlockSpec((F, PADDED_CLASSES), lambda i: (0, 0)),  # W (VMEM-resident)
            ],
            out_specs=(
                pl.BlockSpec((TM, F), lambda i: (i, 0)),
                pl.BlockSpec((TM, PADDED_CLASSES), lambda i: (i, 0)),
            ),
        ),
        compiler_params=pltpu.CompilerParams(
            dimension_semantics=("parallel",),
            vmem_limit_bytes=vmem_limit),
        cost_estimate=cost,
    )(x, noise, w_bf16)

    xt = xt.reshape(B, C, H, W)
    # Bias folded here (exact: padded W columns are exactly zero — including in
    # bf16 — so only the first 10 logit columns are nonzero).
    logits_out = logits[:, :NUM_CLASSES] + bias_real[None, :]
    return xt, logits_out


def make_ddpm_coeffs(sigma=0.5, T=1000):
    """Reproduce the module's timestep selection and q_sample coefficients."""
    betas = np.linspace(1e-4, 0.02, T, dtype=np.float64)
    alphas_cumprod = np.cumprod(1.0 - betas)
    sqrt_ac = np.sqrt(alphas_cumprod)
    sqrt_1mac = np.sqrt(1.0 - alphas_cumprod)
    # self.t from DiffusionModel.__init__
    sigma2 = sigma * 2.0
    t_cont = T * (1.0 - 2.0 * 1.008 *
                  math.asin(math.sin(math.pi / (2 * 1.008)) /
                            (1.0 + sigma2 ** 2) ** 0.5) / math.pi)
    t = int(t_cont)
    return float(sqrt_ac[t]), float(sqrt_1mac[t]), t


if __name__ == "__main__":
    key = jax.random.PRNGKey(0)
    kx, kn, kw, kb = jax.random.split(key, 4)

    B, C, H, W = 2, 3, 32, 32                 # CIFAR-10 images (small batch)
    F = C * H * W

    x = jax.random.uniform(kx, (B, C, H, W), dtype=jnp.float32)      # images in [0, 1]
    noise = jax.random.normal(kn, (B, C, H, W), dtype=jnp.float32)   # torch.randn_like

    # deterministic synthetic classifier-head params (real classes in first 10 cols)
    w_real = jax.random.normal(kw, (F, NUM_CLASSES), dtype=jnp.float32) * 0.02
    w_pad = jnp.zeros((F, PADDED_CLASSES), dtype=jnp.float32).at[:, :NUM_CLASSES].set(w_real)
    w_bf16 = w_pad.astype(jnp.bfloat16)       # bf16 weight for the MXU path
    b_real = jax.random.normal(kb, (NUM_CLASSES,), dtype=jnp.float32) * 0.02

    a_coef, b_coef, t = make_ddpm_coeffs(sigma=0.5, T=1000)

    x_t, logits = diffusion_forward(x, noise, a_coef, b_coef, w_bf16, b_real)
    jax.block_until_ready((x_t, logits))

    # pure-JAX reference checks
    x_in_ref = x.reshape(B, F) * 2.0 - 1.0
    x_t_ref = a_coef * x_in_ref + b_coef * noise.reshape(B, F)
    # bf16-matched reference (same casts as the kernel's MXU path)
    logits_bf16_ref = (jnp.dot(x_t_ref.astype(jnp.bfloat16), w_bf16,
                               preferred_element_type=jnp.float32)[:, :NUM_CLASSES]
                       + b_real)
    # full f32 reference (looser: checks bf16 weight precision is acceptable)
    logits_f32_ref = x_t_ref @ w_real + b_real

    assert jnp.allclose(x_t.reshape(B, F), x_t_ref, atol=1e-5)
    assert jnp.allclose(logits, logits_bf16_ref, atol=1e-3)
    assert jnp.allclose(logits, logits_f32_ref, atol=5e-2)
    assert logits.shape == (B, NUM_CLASSES)

    print("KERNEL_OK")
</pallas_src>

<mosaic_0001>
module attributes {stable_mosaic.version = 11 : i64} {
  func.func @kernel(%arg0: i32, %arg1: memref<2x3072xf32, #tpu.memory_space<vmem>>, %arg2: memref<2x3072xf32, #tpu.memory_space<vmem>>, %arg3: memref<3072x128xbf16, #tpu.memory_space<vmem>>, %arg4: memref<2x3072xf32, #tpu.memory_space<vmem>>, %arg5: memref<2x128xf32, #tpu.memory_space<vmem>>) attributes {dimension_semantics = [#tpu.dimension_semantics<parallel>], iteration_bounds = array<i64: 1>, scalar_prefetch = 0 : i64, scratch_operands = 0 : i64, tpu.core_type = #tpu.core_type<tc>, window_params = [{transform_indices = @transform_0, window_bounds = array<i64: 2, 3072>}, {transform_indices = @transform_1, window_bounds = array<i64: 2, 3072>}, {pipeline_mode = #tpu.pipeline_mode<synchronous>, transform_indices = @transform_2, window_bounds = array<i64: 3072, 128>}, {transform_indices = @transform_3, window_bounds = array<i64: 2, 3072>}, {transform_indices = @transform_4, window_bounds = array<i64: 2, 128>}]} {
    %c0 = arith.constant 0 : index
    %c0_0 = arith.constant 0 : index
    %0 = vector.load %arg1[%c0, %c0_0] : memref<2x3072xf32, #tpu.memory_space<vmem>>, vector<2x3072xf32>
    %cst = arith.constant 0.569202065 : f32
    %1 = vector.broadcast %cst : f32 to vector<2x3072xf32>
    %2 = arith.mulf %1, %0 : vector<2x3072xf32>
    %c0_1 = arith.constant 0 : index
    %c0_2 = arith.constant 0 : index
    %3 = vector.load %arg2[%c0_1, %c0_2] : memref<2x3072xf32, #tpu.memory_space<vmem>>, vector<2x3072xf32>
    %cst_3 = arith.constant 0.958646059 : f32
    %4 = vector.broadcast %cst_3 : f32 to vector<2x3072xf32>
    %5 = arith.mulf %4, %3 : vector<2x3072xf32>
    %6 = arith.addf %2, %5 : vector<2x3072xf32>
    %cst_4 = arith.constant -0.284601033 : f32
    %7 = vector.broadcast %cst_4 : f32 to vector<2x3072xf32>
    %8 = arith.addf %6, %7 : vector<2x3072xf32>
    %c0_5 = arith.constant 0 : index
    %c0_6 = arith.constant 0 : index
    %9 = vector.load %arg4[%c0_5, %c0_6] : memref<2x3072xf32, #tpu.memory_space<vmem>>, vector<2x3072xf32>
    tpu.vector_store %arg4[%c0_5, %c0_6], %8 {strides = array<i32>} : memref<2x3072xf32, #tpu.memory_space<vmem>>, vector<2x3072xf32>,
    %10 = arith.truncf %8 : vector<2x3072xf32> to vector<2x3072xbf16>
    %c0_7 = arith.constant 0 : index
    %c0_8 = arith.constant 0 : index
    %11 = vector.load %arg3[%c0_7, %c0_8] : memref<3072x128xbf16, #tpu.memory_space<vmem>>, vector<3072x128xbf16>
    %cst_9 = arith.constant dense<0.000000e+00> : vector<2x128xf32>
    %12 = tpu.matmul %10, %11, %cst_9 {dimension_numbers = #tpu.dot_dimension_numbers<[1], [0], [0], [1], [0, 0, 1, 1], [], []>} : vector<2x3072xbf16>, vector<3072x128xbf16>, vector<2x128xf32> -> vector<2x128xf32>
    %c0_10 = arith.constant 0 : index
    %c0_11 = arith.constant 0 : index
    %13 = vector.load %arg5[%c0_10, %c0_11] : memref<2x128xf32, #tpu.memory_space<vmem>>, vector<2x128xf32>
    tpu.vector_store %arg5[%c0_10, %c0_11], %12 {strides = array<i32>} : memref<2x128xf32, #tpu.memory_space<vmem>>, vector<2x128xf32>,
    return
  }
  func.func @transform_0(%arg0: i32) -> (i32, i32) {
    %c0_i32 = arith.constant 0 : i32
    %c0_i32_0 = arith.constant 0 : i32
    return %arg0, %c0_i32 : i32, i32
  }
  func.func @transform_1(%arg0: i32) -> (i32, i32) {
    %c0_i32 = arith.constant 0 : i32
    %c0_i32_0 = arith.constant 0 : i32
    return %arg0, %c0_i32 : i32, i32
  }
  func.func @transform_2(%arg0: i32) -> (i32, i32) {
    %c0_i32 = arith.constant 0 : i32
    %c0_i32_0 = arith.constant 0 : i32
    %c0_i32_1 = arith.constant 0 : i32
    return %c0_i32, %c0_i32_0 : i32, i32
  }
  func.func @transform_3(%arg0: i32) -> (i32, i32) {
    %c0_i32 = arith.constant 0 : i32
    %c0_i32_0 = arith.constant 0 : i32
    return %arg0, %c0_i32 : i32, i32
  }
  func.func @transform_4(%arg0: i32) -> (i32, i32) {
    %c0_i32 = arith.constant 0 : i32
    %c0_i32_0 = arith.constant 0 : i32
    return %arg0, %c0_i32 : i32, i32
  }
}

</mosaic_0001>

<bundles_post_ra>
// kernel: tpu_custom_call.1
= control target key start
LH: loop header
LB: loop body
LE: loop exit
PB: predicated region body
PF: predicated region fallthrough
CT: control target
= control target key end

     0   :  { %10 = vsyncpa [#allocation3], 0  ;;  %s3127_s0 = inlined_call_operand.hbm [shape: f32[2,3072], index: 0, kind: input, shape index: {}]   ;;  %s3128_s1 = inlined_call_operand.hbm [shape: f32[2,3072], index: 1, kind: input, shape index: {}]   ;;  %s3129_s2 = inlined_call_operand.hbm [shape: bf16[3072,128], index: 2, kind: input, shape index: {}]   ;;  %s3130_s3 = inlined_call_operand.hbm [shape: f32[2,3072], index: 3, kind: output, shape index: {0}]   ;;  %s3131_s4 = inlined_call_operand.hbm [shape: f32[2,128], index: 4, kind: output, shape index: {1}]  }
   0x1   :  { %11 = vsyncpa [#allocation6], 0 }
   0x2   :  { %12 = vsyncpa [#allocation4], 0 }
   0x3   :  { %13 = vsyncpa [#allocation10], 0  ;;  %s3065_s15 = smov [#allocation5]   ;;  %s3066_s17 = smov [#allocation2]  }
   0x4   :  { %s30_s16 = sshll.u32 %s3065_s15, 4  ;;  %s20_s18 = sshll.u32 %s3066_s17, 4  ;;  %s31_s16 = int_to_ptr.vmem [resolvable:$true] %s30_s16  ;;  %s21_s18 = int_to_ptr.vmem [resolvable:$true] %s20_s18 }
   0x5   :  { %s2965_s19 = scalar_lea.vmem %s31_s16, 768  ;;  %p2970_p1 = scmp.lt.s32.totalorder %s31_s16, %s31_s16 }
   0x6   :  { %p2966_p0 = scmp.ne.s32.totalorder %s31_s16, %s2965_s19  ;;  %p2971_p2 = scmp.lt.s32.totalorder %s2965_s19, %s2965_s19 }
   0x8   :  { %p2972_p3 = por %p2971_p2, %p2970_p1 }
   0xa   :  { %p2973_p4 = pnand %p2972_p3, %p2966_p0 }
   0xc   :  { %2976 = shalt.err (!%p2973_p4)
}
   0xd   :  { %33 = dma.hbm_to_vmem [thread:$0]  %s3128_s1, 768, %s31_s16, [#allocation6]  }
   0xe   :  { %s2985_s22 = scalar_lea.vmem %s21_s18, 768  ;;  %p2990_p6 = scmp.lt.s32.totalorder %s21_s18, %s21_s18 }
   0xf   :  { %p2986_p5 = scmp.ne.s32.totalorder %s21_s18, %s2985_s22  ;;  %p2991_p7 = scmp.lt.s32.totalorder %s2985_s22, %s2985_s22 }
  0x11   :  { %p2992_p8 = por %p2991_p7, %p2990_p6 }
  0x13   :  { %p2993_p9 = pnand %p2992_p8, %p2986_p5 }
  0x15   :  { %2996 = shalt.err (!%p2993_p9)
}
  0x16   :  { %23 = dma.hbm_to_vmem [thread:$0]  %s3127_s0, 768, %s21_s18, [#allocation3]  }
  0x17   :  { %s3067_s25 = smov [#allocation7]  }
  0x18   :  { %s39_s26 = sshll.u32 %s3067_s25, 4  ;;  %s40_s26 = int_to_ptr.vmem [resolvable:$true] %s39_s26 }
  0x19   :  { %s3005_s27 = scalar_lea.vmem %s40_s26, 24576  ;;  %p3010_p11 = scmp.lt.s32.totalorder %s40_s26, %s40_s26 }
  0x1a   :  { %p3006_p10 = scmp.ne.s32.totalorder %s40_s26, %s3005_s27  ;;  %p3011_p12 = scmp.lt.s32.totalorder %s3005_s27, %s3005_s27 }
  0x1c   :  { %p3012_p13 = por %p3011_p12, %p3010_p11 }
  0x1e   :  { %p3013_p0 = pnand %p3012_p13, %p3006_p10 }
  0x20   :  { %3016 = shalt.err (!%p3013_p0)
}
  0x21   :  { %s3068_s1 = smov 64   ;;  %s3069_s28 = smov 4  }
  0x22   :  { %45 = dma.hbm_to_vmem [thread:$0]  %s3129_s2, 24576, %s40_s26, [#allocation6], %s3068_s1, %s3068_s1, %s3069_s28  }
  0x23   :  { %3057 = dma.done.wait [#allocation3], 768  }
  0x24   :  { %3058 = vsyncadd [#allocation3], 4294966528 }
  0x25   :  { %3059 = dma.done.wait [#allocation6], 25344  }
  0x26   :  { %3060 = vsyncadd [#allocation6], 4294941952  ;;  %v2765_v0 = vld [vmem:[#allocation7 + $0x78] sm:$0xff]   ;;  %v2769_v4 = vld [vmem:[#allocation7 + $0x70] sm:$0xff]   ;;  %v3070_v28 = vmov 1983009808   ;;  %v108_v30 = vlaneseq }
  0x27   :  { %v2766_v1 = vld [vmem:[#allocation7 + $0xf8] sm:$0xff]   ;;  %2493 = vmatprep.subr.bf16.mxu0 %v2765_v0  ;;  %v2770_v5 = vld [vmem:[#allocation7 + $0xf0] sm:$0xff]   ;;  %v2773_v8 = vld [vmem:[#allocation7 + $0x68] sm:$0xff]   ;;  %v106_v29 = vunpack.c.l.s4 %v3070_v28  ;;  %s3071_s0 = smov [#allocation8]  }
  0x28   :  { %v2767_v2 = vld [vmem:[#allocation7 + $0x38] sm:$0xff]   ;;  %2515 = vmatprep.subr.bf16.mxu1 %v2766_v1  ;;  %v2771_v6 = vld [vmem:[#allocation7 + $0x30] sm:$0xff]   ;;  %v2774_v9 = vld [vmem:[#allocation7 + $0xe8] sm:$0xff]   ;;  %v109_v36 = vshrl.u32 %v108_v30, 7  ;;  %s2277_s2 = sshll.u32 %s3071_s0, 4  ;;  %s2278_s2 = int_to_ptr.vmem [resolvable:$true] %s2277_s2 }
  0x29   :  { %v2768_v3 = vld [vmem:[#allocation7 + $0xb8] sm:$0xff]   ;;  %2494 = vmatpush3.bf16.msra.mxu0 %v2767_v2  ;;  %v2772_v7 = vld [vmem:[#allocation7 + $0xb0] sm:$0xff]   ;;  %v2775_v10 = vld [vmem:[#allocation7 + $0x28] sm:$0xff]   ;;  %v107_v35 = vunpack.c.0.s8 %v106_v29  ;;  %s3017_s5 = scalar_lea.vmem %s2278_s2, 768  ;;  %p3022_p2 = scmp.lt.s32.totalorder %s2278_s2, %s2278_s2 }
  0x2a   :  { %2516 = vmatpush3.bf16.msra.mxu1 %v2768_v3  ;;  %2495 = vmatprep.subr.bf16.mxu0 %v2769_v4  ;;  %v2776_v11 = vld [vmem:[#allocation7 + $0xa8] sm:$0xff]   ;;  %v2777_v12 = vld [vmem:[#allocation7 + $0x60] sm:$0xff]   ;;  %v2781_v16 = vld [vmem:[#allocation7 + $0x58] sm:$0xff]   ;;  %p3018_p1 = scmp.ne.s32.totalorder %s2278_s2, %s3017_s5  ;;  %p3023_p3 = scmp.lt.s32.totalorder %s3017_s5, %s3017_s5 }
  0x2b   :  { %2517 = vmatprep.subr.bf16.mxu1 %v2770_v5  ;;  %v2778_v13 = vld [vmem:[#allocation7 + $0xe0] sm:$0xff]   ;;  %v2782_v17 = vld [vmem:[#allocation7 + $0xd8] sm:$0xff]   ;;  %v2785_v20 = vld [vmem:[#allocation7 + $0x50] sm:$0xff]   ;;  %v3107_v43 = vsub.s32 %v107_v35, %v109_v36 }
  0x2c   :  { %v2779_v14 = vld [vmem:[#allocation7 + $0x20] sm:$0xff]   ;;  %v2783_v18 = vld [vmem:[#allocation7 + $0x18] sm:$0xff]   ;;  %v2786_v21 = vld [vmem:[#allocation7 + $0xd0] sm:$0xff]   ;;  %p3024_p4 = por %p3023_p3, %p3022_p2 }
  0x2d   :  { %2496 = vmatpush3.bf16.msra.mxu0 %v2771_v6  ;;  %v2780_v15 = vld [vmem:[#allocation7 + $0xa0] sm:$0xff]   ;;  %v2784_v19 = vld [vmem:[#allocation7 + $0x98] sm:$0xff]   ;;  %v2787_v22 = vld [vmem:[#allocation7 + $0x10] sm:$0xff]  }
  0x2e   :  { %2518 = vmatpush3.bf16.msra.mxu1 %v2772_v7  ;;  %2497 = vmatprep.subr.bf16.mxu0 %v2773_v8  ;;  %v2788_v23 = vld [vmem:[#allocation7 + $0x90] sm:$0xff]   ;;  %v2789_v24 = vld [vmem:[#allocation7 + $0x48] sm:$0xff]   ;;  %v2793_v31 = vld [vmem:[#allocation7 + $0x40] sm:$0xff]   ;;  %p3025_p5 = pnand %p3024_p4, %p3018_p1 }
  0x2f   :  { %2519 = vmatprep.subr.bf16.mxu1 %v2774_v9  ;;  %v2790_v25 = vld [vmem:[#allocation7 + $0xc8] sm:$0xff]   ;;  %v2794_v32 = vld [vmem:[#allocation7 + $0xc0] sm:$0xff]   ;;  %v68_v38 = vld [vmem:[#allocation5] sm:$0xff] }
  0x30   :  { %v2791_v26 = vld [vmem:[#allocation7 + $0x8] sm:$0xff]   ;;  %v2795_v33 = vld [vmem:[#allocation7] sm:$0xff]   ;;  %v74_v40 = vmul.f32 0.95864606, %v68_v38  ;;  %v2797_v41 = vld [vmem:[#allocation7 + $0x178] sm:$0xff]  }
  0x31   :  { %2498 = vmatpush3.bf16.msra.mxu0 %v2775_v10  ;;  %v2792_v27 = vld [vmem:[#allocation7 + $0x88] sm:$0xff]   ;;  %v2796_v34 = vld [vmem:[#allocation7 + $0x80] sm:$0xff]   ;;  %v2798_v44 = vld [vmem:[#allocation7 + $0x1f8] sm:$0xff]  }
  0x32   :  { %2520 = vmatpush3.bf16.msra.mxu1 %v2776_v11  ;;  %2499 = vmatprep.subr.bf16.mxu0 %v2777_v12  ;;  %v56_v37 = vld [vmem:[#allocation2] sm:$0xff]  ;;  %v2799_v51 = vld [vmem:[#allocation7 + $0x138] sm:$0xff]   ;;  %v2801_v56 = vld [vmem:[#allocation7 + $0x170] sm:$0xff]  }
  0x33   :  { %2521 = vmatprep.subr.bf16.mxu1 %v2778_v13  ;;  %v62_v39 = vmul.f32 0.56920207, %v56_v37  ;;  %v2800_v54 = vld [vmem:[#allocation7 + $0x1b8] sm:$0xff]   ;;  %v2802_v58 = vld [vmem:[#allocation7 + $0x1f0] sm:$0xff]   ;;  %v2805_v61 = vld [vmem:[#allocation7 + $0x168] sm:$0xff]  }
  0x34   :  { %v2803_v59 = vld [vmem:[#allocation7 + $0x130] sm:$0xff]   ;;  %v2806_v62 = vld [vmem:[#allocation7 + $0x1e8] sm:$0xff]   ;;  %v2809_v1 = vld [vmem:[#allocation7 + $0x160] sm:$0xff]  }
  0x35   :  { %2500 = vmatpush3.bf16.msra.mxu0 %v2779_v14  ;;  %v80_v42 = vadd.f32 %v74_v40, %v62_v39  ;;  %v2804_v60 = vld [vmem:[#allocation7 + $0x1b0] sm:$0xff]   ;;  %v2807_v63 = vld [vmem:[#allocation7 + $0x128] sm:$0xff]   ;;  %v2810_v2 = vld [vmem:[#allocation7 + $0x1e0] sm:$0xff]  }
  0x36   :  { %2522 = vmatpush3.bf16.msra.mxu1 %v2780_v15  ;;  %2501 = vmatprep.subr.bf16.mxu0 %v2781_v16  ;;  %v2808_v0 = vld [vmem:[#allocation7 + $0x1a8] sm:$0xff]   ;;  %v2811_v3 = vld [vmem:[#allocation7 + $0x120] sm:$0xff]   ;;  %v2813_v5 = vld [vmem:[#allocation7 + $0x158] sm:$0xff]  }
  0x37   :  { %2523 = vmatprep.subr.bf16.mxu1 %v2782_v17  ;;  %v86_v45 = vadd.f32 -0.28460103, %v80_v42  ;;  %v2812_v4 = vld [vmem:[#allocation7 + $0x1a0] sm:$0xff]   ;;  %v2814_v6 = vld [vmem:[#allocation7 + $0x1d8] sm:$0xff]   ;;  %v2817_v9 = vld [vmem:[#allocation7 + $0x150] sm:$0xff]  }
  0x38   :  { %v2815_v7 = vld [vmem:[#allocation7 + $0x118] sm:$0xff]   ;;  %v2818_v10 = vld [vmem:[#allocation7 + $0x1d0] sm:$0xff]   ;;  %v2821_v13 = vld [vmem:[#allocation7 + $0x148] sm:$0xff]  }
  0x39   :  { %2502 = vmatpush3.bf16.msra.mxu0 %v2783_v18  ;;  %92 = vst [vmem:[#allocation8] sm:$0xff] %v86_v45  ;;  %v111_v46 = vrot.slane %v86_v45, %v3107_v43  ;;  %v104_v47 = vcombine.high %v86_v45, %v86_v45  ;;  %v2816_v8 = vld [vmem:[#allocation7 + $0x198] sm:$0xff]   ;;  %v2819_v11 = vld [vmem:[#allocation7 + $0x110] sm:$0xff]   ;;  %v2822_v14 = vld [vmem:[#allocation7 + $0x1c8] sm:$0xff]  }
  0x3a   :  { %2524 = vmatpush3.bf16.msra.mxu1 %v2784_v19  ;;  %2503 = vmatprep.subr.bf16.mxu0 %v2785_v20  ;;  %v2820_v12 = vld [vmem:[#allocation7 + $0x190] sm:$0xff]   ;;  %v57_v15 = vld [vmem:[#allocation2 + $0x8] sm:$0xff]  ;;  %v69_v16 = vld [vmem:[#allocation5 + $0x8] sm:$0xff] }
  0x3b   :  { %2525 = vmatprep.subr.bf16.mxu1 %v2786_v21  ;;  %v119_v48 = vcombine.high %v111_v46, %v111_v46  ;;  %v118_v49 = vrot.slane %v104_v47, %v3107_v43  ;;  %v230_v50 = vpack.c.bf16 %v111_v46, %v111_v46  ;;  %v63_v17 = vmul.f32 0.56920207, %v57_v15  ;;  %v2823_v19 = vld [vmem:[#allocation7 + $0x108] sm:$0xff]   ;;  %v2825_v20 = vld [vmem:[#allocation7 + $0x140] sm:$0xff]   ;;  %v2829_v28 = vld [vmem:[#allocation7 + $0x278] sm:$0xff]  }
  0x3c   :  { %v75_v18 = vmul.f32 0.95864606, %v69_v16  ;;  %v2828_v29 = vld [vmem:[#allocation7 + $0x180] sm:$0xff]   ;;  %v2832_v37 = vld [vmem:[#allocation7 + $0x2b8] sm:$0xff]   ;;  %v2833_v39 = vld [vmem:[#allocation7 + $0x270] sm:$0xff]  }
  0x3d   :  { %2504 = vmatpush3.bf16.msra.mxu0 %v2787_v22  ;;  %v231_v52 = vpack.c.bf16 %v119_v48, %v119_v48  ;;  %v120_v53 = vcombine.high %v118_v49, %v118_v49  ;;  %v232_v55 = vpack.c.bf16 %v118_v49, %v118_v49  ;;  %v2824_v22 = vld [vmem:[#allocation7 + $0x188] sm:$0xff]   ;;  %v2835_v42 = vld [vmem:[#allocation7 + $0x230] sm:$0xff]   ;;  %v2841_v49 = vld [vmem:[#allocation7 + $0x260] sm:$0xff]  }
  0x3e   :  { %2526 = vmatpush3.bf16.msra.mxu1 %v2788_v23  ;;  %2505 = vmatprep.subr.bf16.mxu0 %v2789_v24  ;;  %v81_v21 = vadd.f32 %v75_v18, %v63_v17  ;;  %v2826_v23 = vld [vmem:[#allocation7 + $0x1c0] sm:$0xff]   ;;  %v2837_v45 = vld [vmem:[#allocation7 + $0x268] sm:$0xff]   ;;  %v2863_v18 = vld [vmem:[#allocation7 + $0x338] sm:$0xff]  }
  0x3f   :  { %2527 = vmatprep.subr.bf16.mxu1 %v2790_v25  ;;  %1822 = vmatprep.mubr.bf16.mxu0 %v231_v52  ;;  %v233_v57 = vpack.c.bf16 %v120_v53, %v120_v53  ;;  %v2827_v24 = vld [vmem:[#allocation7 + $0x100] sm:$0xff]   ;;  %v2838_v46 = vld [vmem:[#allocation7 + $0x2e8] sm:$0xff]   ;;  %v2845_v53 = vld [vmem:[#allocation7 + $0x258] sm:$0xff]  }
  0x40   :  { %v87_v25 = vadd.f32 -0.28460103, %v81_v21  ;;  %v2839_v47 = vld [vmem:[#allocation7 + $0x228] sm:$0xff]   ;;  %v2844_v52 = vld [vmem:[#allocation7 + $0x2a0] sm:$0xff]   ;;  %v2864_v21 = vld [vmem:[#allocation7 + $0x3b8] sm:$0xff]  }
  0x41   :  { %2506 = vmatpush3.bf16.msra.mxu0 %v2791_v26  ;;  %1862 = vmatprep.mubr.bf16.mxu1 %v233_v57  ;;  %v2840_v48 = vld [vmem:[#allocation7 + $0x2a8] sm:$0xff]   ;;  %v2849_v57 = vld [vmem:[#allocation7 + $0x250] sm:$0xff]  }
  0x42   :  { %2528 = vmatpush3.bf16.msra.mxu1 %v2792_v27  ;;  %2507 = vmatprep.subr.bf16.mxu0 %v2793_v31  ;;  %v128_v26 = vrot.slane %v87_v25, %v3107_v43  ;;  %93 = vst [vmem:[#allocation8 + $0x8] sm:$0xff] %v87_v25  ;;  %v121_v27 = vcombine.high %v87_v25, %v87_v25  ;;  %v2866_v25 = vld [vmem:[#allocation7 + $0x3f0] sm:$0xff]  }
  0x43   :  { %2529 = vmatprep.subr.bf16.mxu1 %v2794_v32  ;;  %v2830_v32 = vld [vmem:[#allocation7 + $0x2f8] sm:$0xff]  }
  0x44   :  { %v136_v30 = vcombine.high %v128_v26, %v128_v26  ;;  %v135_v31 = vrot.slane %v121_v27, %v3107_v43  ;;  %v2868_v27 = vld [vmem:[#allocation7 + $0x3b0] sm:$0xff]  }
  0x45   :  { %2508 = vmatpush3.bf16.msra.mxu0 %v2795_v33  ;;  %v234_v33 = vpack.c.bf16 %v128_v26, %v128_v26  ;;  %v2867_v26 = vld [vmem:[#allocation7 + $0x330] sm:$0xff]  }
  0x46   :  { %2530 = vmatpush3.bf16.msra.mxu1 %v2796_v34  ;;  %2537 = vmatprep.subr.bf16.mxu0 %v2797_v41  ;;  %v2831_v34 = vld [vmem:[#allocation7 + $0x238] sm:$0xff]   ;;  %v235_v35 = vpack.c.bf16 %v136_v30, %v136_v30  ;;  %v137_v36 = vcombine.high %v135_v31, %v135_v31  ;;  %v236_v38 = vpack.c.bf16 %v135_v31, %v135_v31  ;;  %v2834_v41 = vld [vmem:[#allocation7 + $0x2f0] sm:$0xff]   ;;  %v2871_v30 = vld [vmem:[#allocation7 + $0x328] sm:$0xff]  }
  0x47   :  { %2559 = vmatprep.subr.bf16.mxu1 %v2798_v44  ;;  %v2836_v44 = vld [vmem:[#allocation7 + $0x2b0] sm:$0xff]   ;;  %v2872_v31 = vld [vmem:[#allocation7 + $0x3a8] sm:$0xff]  }
  0x48   :  { %1823 = vmatmul.mubr.bf16.vlgmr.msra.gmra.mxu0 %v230_v50  ;;  %v237_v40 = vpack.c.bf16 %v137_v36, %v137_v36  ;;  %v2842_v50 = vld [vmem:[#allocation7 + $0x2e0] sm:$0xff]   ;;  %v2877_v36 = vld [vmem:[#allocation7 + $0x358] sm:$0xff]  }
  0x49   :  { %2538 = vmatpush3.bf16.msra.mxu0 %v2799_v51  ;;  %1863 = vmatmul.mubr.bf16.vlgmr.msra.gmra.mxu1 %v232_v55  ;;  %v2843_v51 = vld [vmem:[#allocation7 + $0x220] sm:$0xff]   ;;  %v2847_v55 = vld [vmem:[#allocation7 + $0x218] sm:$0xff]  }
  0x4a   :  { %2539 = vmatprep.subr.bf16.mxu0 %v2801_v56  ;;  %2560 = vmatpush3.bf16.msra.mxu1 %v2800_v54  ;;  %v2846_v54 = vld [vmem:[#allocation7 + $0x2d8] sm:$0xff]  }
  0x4b   :  { %2561 = vmatprep.subr.bf16.mxu1 %v2802_v58  ;;  %1902 = vmatprep.mubr.bf16.mxu0 %v235_v35  ;;  %v2848_v56 = vld [vmem:[#allocation7 + $0x298] sm:$0xff]   ;;  %v2850_v58 = vld [vmem:[#allocation7 + $0x2d0] sm:$0xff]   ;;  %v2876_v35 = vld [vmem:[#allocation7 + $0x3a0] sm:$0xff]  }
  0x4c   :  { %1942 = vmatprep.mubr.bf16.mxu1 %v237_v40  ;;  %v2881_v40 = vld [vmem:[#allocation7 + $0x350] sm:$0xff]  }
  0x4d   :  { %2540 = vmatpush3.bf16.msra.mxu0 %v2803_v59  ;;  %v2851_v59 = vld [vmem:[#allocation7 + $0x210] sm:$0xff]  }
  0x4e   :  { %2541 = vmatprep.subr.bf16.mxu0 %v2805_v61  ;;  %2562 = vmatpush3.bf16.msra.mxu1 %v2804_v60  ;;  %v2852_v60 = vld [vmem:[#allocation7 + $0x290] sm:$0xff]   ;;  %v2853_v61 = vld [vmem:[#allocation7 + $0x248] sm:$0xff]  }
  0x4f   :  { %2563 = vmatprep.subr.bf16.mxu1 %v2806_v62  ;;  %v2854_v62 = vld [vmem:[#allocation7 + $0x2c8] sm:$0xff]  }
  0x51   :  { %2542 = vmatpush3.bf16.msra.mxu0 %v2807_v63  ;;  %v58_v63 = vld [vmem:[#allocation2 + $0x10] sm:$0xff] }
  0x52   :  { %2543 = vmatprep.subr.bf16.mxu0 %v2809_v1  ;;  %2564 = vmatpush3.bf16.msra.mxu1 %v2808_v0  ;;  %v2855_v0 = vld [vmem:[#allocation7 + $0x208] sm:$0xff]   ;;  %v64_v1 = vmul.f32 0.56920207, %v58_v63 }
  0x53   :  { %2565 = vmatprep.subr.bf16.mxu1 %v2810_v2  ;;  %v70_v2 = vld [vmem:[#allocation5 + $0x10] sm:$0xff] }
  0x55   :  { %2544 = vmatpush3.bf16.msra.mxu0 %v2811_v3  ;;  %v76_v3 = vmul.f32 0.95864606, %v70_v2  ;;  %v2895_v2 = vld [vmem:[#allocation7 + $0x438] sm:$0xff]  }
  0x56   :  { %2545 = vmatprep.subr.bf16.mxu0 %v2813_v5  ;;  %2566 = vmatpush3.bf16.msra.mxu1 %v2812_v4  ;;  %v2857_v4 = vld [vmem:[#allocation7 + $0x240] sm:$0xff]   ;;  %v2856_v5 = vld [vmem:[#allocation7 + $0x288] sm:$0xff]  }
  0x57   :  { %2567 = vmatprep.subr.bf16.mxu1 %v2814_v6  ;;  %v82_v6 = vadd.f32 %v76_v3, %v64_v1 }
  0x59   :  { %2546 = vmatpush3.bf16.msra.mxu0 %v2815_v7  ;;  %v2858_v7 = vld [vmem:[#allocation7 + $0x2c0] sm:$0xff]  }
  0x5a   :  { %2547 = vmatprep.subr.bf16.mxu0 %v2817_v9  ;;  %2568 = vmatpush3.bf16.msra.mxu1 %v2816_v8  ;;  %v2859_v8 = vld [vmem:[#allocation7 + $0x200] sm:$0xff]   ;;  %v88_v9 = vadd.f32 -0.28460103, %v82_v6 }
  0x5b   :  { %2569 = vmatprep.subr.bf16.mxu1 %v2818_v10  ;;  %v2861_v10 = vld [vmem:[#allocation7 + $0x378] sm:$0xff]  }
  0x5c   :  { %94 = vst [vmem:[#allocation8 + $0x10] sm:$0xff] %v88_v9 }
  0x5d   :  { %2548 = vmatpush3.bf16.msra.mxu0 %v2819_v11  ;;  %v2860_v11 = vld [vmem:[#allocation7 + $0x280] sm:$0xff]  }
  0x5e   :  { %2549 = vmatprep.subr.bf16.mxu0 %v2821_v13  ;;  %2570 = vmatpush3.bf16.msra.mxu1 %v2820_v12  ;;  %v145_v12 = vrot.slane %v88_v9, %v3107_v43  ;;  %v138_v13 = vcombine.high %v88_v9, %v88_v9  ;;  %v2898_v9 = vld [vmem:[#allocation7 + $0x4f0] sm:$0xff]  }
  0x5f   :  { %2571 = vmatprep.subr.bf16.mxu1 %v2822_v14  ;;  %v2862_v14 = vld [vmem:[#allocation7 + $0x3f8] sm:$0xff]  }
  0x60   :  { %v153_v15 = vcombine.high %v145_v12, %v145_v12  ;;  %v152_v16 = vrot.slane %v138_v13, %v3107_v43  ;;  %v238_v17 = vpack.c.bf16 %v145_v12, %v145_v12  ;;  %v2901_v12 = vld [vmem:[#allocation7 + $0x468] sm:$0xff]  }
  0x61   :  { %2550 = vmatpush3.bf16.msra.mxu0 %v2823_v19  ;;  %v2902_v13 = vld [vmem:[#allocation7 + $0x4e8] sm:$0xff]  }
  0x62   :  { %2551 = vmatprep.subr.bf16.mxu0 %v2825_v20  ;;  %2572 = vmatpush3.bf16.msra.mxu1 %v2824_v22  ;;  %v239_v19 = vpack.c.bf16 %v153_v15, %v153_v15  ;;  %v154_v20 = vcombine.high %v152_v16, %v152_v16  ;;  %v240_v22 = vpack.c.bf16 %v152_v16, %v152_v16  ;;  %v2904_v15 = vld [vmem:[#allocation7 + $0x4a8] sm:$0xff]   ;;  %v2905_v16 = vld [vmem:[#allocation7 + $0x460] sm:$0xff]  }
  0x63   :  { %2573 = vmatprep.subr.bf16.mxu1 %v2826_v23  ;;  %v2865_v23 = vld [vmem:[#allocation7 + $0x370] sm:$0xff]  }
  0x65   :  { %2552 = vmatpush3.bf16.msra.mxu0 %v2827_v24  ;;  %v241_v24 = vpack.c.bf16 %v154_v20, %v154_v20  ;;  %v2909_v20 = vld [vmem:[#allocation7 + $0x458] sm:$0xff]  }
  0x66   :  { %2581 = vmatprep.subr.bf16.mxu0 %v2829_v28  ;;  %2574 = vmatpush3.bf16.msra.mxu1 %v2828_v29  ;;  %v2869_v28 = vld [vmem:[#allocation7 + $0x368] sm:$0xff]  }
  0x67   :  { %2603 = vmatprep.subr.bf16.mxu1 %v2830_v32  ;;  %v2870_v29 = vld [vmem:[#allocation7 + $0x3e8] sm:$0xff]   ;;  %v2873_v32 = vld [vmem:[#allocation7 + $0x360] sm:$0xff]  }
  0x68   :  { %1903 = vmatmul.mubr.bf16.vlgmr.msra.gmra.mxu0 %v234_v33  ;;  %v2874_v33 = vld [vmem:[#allocation7 + $0x3e0] sm:$0xff]  }
  0x69   :  { %2582 = vmatpush3.bf16.msra.mxu0 %v2831_v34  ;;  %1943 = vmatmul.mubr.bf16.vlgmr.msra.gmra.mxu1 %v236_v38  ;;  %v2875_v34 = vld [vmem:[#allocation7 + $0x320] sm:$0xff]   ;;  %v2879_v38 = vld [vmem:[#allocation7 + $0x318] sm:$0xff]  }
  0x6a   :  { %2583 = vmatprep.subr.bf16.mxu0 %v2833_v39  ;;  %2604 = vmatpush3.bf16.msra.mxu1 %v2832_v37  ;;  %v2878_v37 = vld [vmem:[#allocation7 + $0x3d8] sm:$0xff]  }
  0x6b   :  { %2605 = vmatprep.subr.bf16.mxu1 %v2834_v41  ;;  %1982 = vmatprep.mubr.bf16.mxu0 %v239_v19  ;;  %v2880_v39 = vld [vmem:[#allocation7 + $0x398] sm:$0xff]   ;;  %v2882_v41 = vld [vmem:[#allocation7 + $0x3d0] sm:$0xff]   ;;  %v2908_v19 = vld [vmem:[#allocation7 + $0x4a0] sm:$0xff]  }
  0x6c   :  { %2022 = vmatprep.mubr.bf16.mxu1 %v241_v24  ;;  %v2913_v24 = vld [vmem:[#allocation7 + $0x450] sm:$0xff]  }
  0x6d   :  { %2584 = vmatpush3.bf16.msra.mxu0 %v2835_v42  ;;  %v2883_v42 = vld [vmem:[#allocation7 + $0x310] sm:$0xff]  }
  0x6e   :  { %2585 = vmatprep.subr.bf16.mxu0 %v2837_v45  ;;  %2606 = vmatpush3.bf16.msra.mxu1 %v2836_v44  ;;  %v2884_v44 = vld [vmem:[#allocation7 + $0x390] sm:$0xff]   ;;  %v2885_v45 = vld [vmem:[#allocation7 + $0x348] sm:$0xff]  }
  0x6f   :  { %2607 = vmatprep.subr.bf16.mxu1 %v2838_v46  ;;  %v59_v46 = vld [vmem:[#allocation2 + $0x18] sm:$0xff] }
  0x71   :  { %2586 = vmatpush3.bf16.msra.mxu0 %v2839_v47  ;;  %v2886_v47 = vld [vmem:[#allocation7 + $0x3c8] sm:$0xff]  }
  0x72   :  { %2587 = vmatprep.subr.bf16.mxu0 %v2841_v49  ;;  %2608 = vmatpush3.bf16.msra.mxu1 %v2840_v48  ;;  %v65_v48 = vmul.f32 0.56920207, %v59_v46  ;;  %v71_v49 = vld [vmem:[#allocation5 + $0x18] sm:$0xff] }
  0x73   :  { %2609 = vmatprep.subr.bf16.mxu1 %v2842_v50  ;;  %v77_v50 = vmul.f32 0.95864606, %v71_v49 }
  0x75   :  { %2588 = vmatpush3.bf16.msra.mxu0 %v2843_v51  ;;  %v2887_v51 = vld [vmem:[#allocation7 + $0x308] sm:$0xff]  }
  0x76   :  { %2589 = vmatprep.subr.bf16.mxu0 %v2845_v53  ;;  %2610 = vmatpush3.bf16.msra.mxu1 %v2844_v52  ;;  %v2889_v52 = vld [vmem:[#allocation7 + $0x340] sm:$0xff]   ;;  %v83_v53 = vadd.f32 %v77_v50, %v65_v48  ;;  %v2926_v48 = vld [vmem:[#allocation7 + $0x5f8] sm:$0xff]  }
  0x77   :  { %2611 = vmatprep.subr.bf16.mxu1 %v2846_v54  ;;  %v2888_v54 = vld [vmem:[#allocation7 + $0x388] sm:$0xff]  }
  0x79   :  { %2590 = vmatpush3.bf16.msra.mxu0 %v2847_v55  ;;  %v2890_v55 = vld [vmem:[#allocation7 + $0x3c0] sm:$0xff]  }
  0x7a   :  { %2591 = vmatprep.subr.bf16.mxu0 %v2849_v57  ;;  %2612 = vmatpush3.bf16.msra.mxu1 %v2848_v56  ;;  %v2891_v56 = vld [vmem:[#allocation7 + $0x300] sm:$0xff]   ;;  %v89_v57 = vadd.f32 -0.28460103, %v83_v53 }
  0x7b   :  { %2613 = vmatprep.subr.bf16.mxu1 %v2850_v58 }
  0x7c   :  { %v162_v58 = vrot.slane %v89_v57, %v3107_v43  ;;  %95 = vst [vmem:[#allocation8 + $0x18] sm:$0xff] %v89_v57 }
  0x7d   :  { %2592 = vmatpush3.bf16.msra.mxu0 %v2851_v59  ;;  %v155_v59 = vcombine.high %v89_v57, %v89_v57  ;;  %v2930_v57 = vld [vmem:[#allocation7 + $0x5f0] sm:$0xff]  }
  0x7e   :  { %2593 = vmatprep.subr.bf16.mxu0 %v2853_v61  ;;  %2614 = vmatpush3.bf16.msra.mxu1 %v2852_v60  ;;  %v2893_v60 = vld [vmem:[#allocation7 + $0x478] sm:$0xff]   ;;  %v2892_v61 = vld [vmem:[#allocation7 + $0x380] sm:$0xff]   ;;  %v242_v1 = vpack.c.bf16 %v162_v58, %v162_v58 }
  0x7f   :  { %2615 = vmatprep.subr.bf16.mxu1 %v2854_v62  ;;  %v170_v62 = vcombine.high %v162_v58, %v162_v58  ;;  %v169_v63 = vrot.slane %v155_v59, %v3107_v43  ;;  %v2931_v58 = vld [vmem:[#allocation7 + $0x530] sm:$0xff]   ;;  %v2933_v59 = vld [vmem:[#allocation7 + $0x568] sm:$0xff]  }
  0x81   :  { %2594 = vmatpush3.bf16.msra.mxu0 %v2855_v0  ;;  %v2894_v0 = vld [vmem:[#allocation7 + $0x4f8] sm:$0xff]   ;;  %v243_v3 = vpack.c.bf16 %v170_v62, %v170_v62  ;;  %v244_v6 = vpack.c.bf16 %v169_v63, %v169_v63  ;;  %v2935_v62 = vld [vmem:[#allocation7 + $0x528] sm:$0xff]  }
  0x82   :  { %2595 = vmatprep.subr.bf16.mxu0 %v2857_v4  ;;  %2616 = vmatpush3.bf16.msra.mxu1 %v2856_v5  ;;  %v171_v4 = vcombine.high %v169_v63, %v169_v63  ;;  %v2896_v5 = vld [vmem:[#allocation7 + $0x4b8] sm:$0xff]   ;;  %v2937_v63 = vld [vmem:[#allocation7 + $0x560] sm:$0xff]  }
  0x83   :  { %2617 = vmatprep.subr.bf16.mxu1 %v2858_v7  ;;  %v2897_v7 = vld [vmem:[#allocation7 + $0x470] sm:$0xff]  }
  0x85   :  { %2596 = vmatpush3.bf16.msra.mxu0 %v2859_v8  ;;  %v245_v8 = vpack.c.bf16 %v171_v4, %v171_v4  ;;  %v2940_v4 = vld [vmem:[#allocation7 + $0x5a0] sm:$0xff]  }
  0x86   :  { %2625 = vmatprep.subr.bf16.mxu0 %v2861_v10  ;;  %2618 = vmatpush3.bf16.msra.mxu1 %v2860_v11  ;;  %v2899_v10 = vld [vmem:[#allocation7 + $0x430] sm:$0xff]  }
  0x87   :  { %2647 = vmatprep.subr.bf16.mxu1 %v2862_v14  ;;  %v2900_v11 = vld [vmem:[#allocation7 + $0x4b0] sm:$0xff]   ;;  %v2903_v14 = vld [vmem:[#allocation7 + $0x428] sm:$0xff]  }
  0x88   :  { %1983 = vmatmul.mubr.bf16.vlgmr.msra.gmra.mxu0 %v238_v17  ;;  %v2906_v17 = vld [vmem:[#allocation7 + $0x4e0] sm:$0xff]  }
  0x89   :  { %2626 = vmatpush3.bf16.msra.mxu0 %v2863_v18  ;;  %2023 = vmatmul.mubr.bf16.vlgmr.msra.gmra.mxu1 %v240_v22  ;;  %v2907_v18 = vld [vmem:[#allocation7 + $0x420] sm:$0xff]   ;;  %v2911_v22 = vld [vmem:[#allocation7 + $0x418] sm:$0xff]  }
  0x8a   :  { %2627 = vmatprep.subr.bf16.mxu0 %v2865_v23  ;;  %2648 = vmatpush3.bf16.msra.mxu1 %v2864_v21  ;;  %v2910_v21 = vld [vmem:[#allocation7 + $0x4d8] sm:$0xff]  }
  0x8b   :  { %2649 = vmatprep.subr.bf16.mxu1 %v2866_v25  ;;  %2062 = vmatprep.mubr.bf16.mxu0 %v243_v3  ;;  %v2912_v23 = vld [vmem:[#allocation7 + $0x498] sm:$0xff]   ;;  %v2914_v25 = vld [vmem:[#allocation7 + $0x4d0] sm:$0xff]  }
  0x8c   :  { %2102 = vmatprep.mubr.bf16.mxu1 %v245_v8  ;;  %v2941_v3 = vld [vmem:[#allocation7 + $0x558] sm:$0xff]  }
  0x8d   :  { %2628 = vmatpush3.bf16.msra.mxu0 %v2867_v26  ;;  %v2915_v26 = vld [vmem:[#allocation7 + $0x410] sm:$0xff]   ;;  %v2944_v8 = vld [vmem:[#allocation7 + $0x598] sm:$0xff]  }
  0x8e   :  { %2629 = vmatprep.subr.bf16.mxu0 %v2869_v28  ;;  %2650 = vmatpush3.bf16.msra.mxu1 %v2868_v27  ;;  %v2916_v27 = vld [vmem:[#allocation7 + $0x490] sm:$0xff]   ;;  %v2917_v28 = vld [vmem:[#allocation7 + $0x448] sm:$0xff]  }
  0x8f   :  { %2651 = vmatprep.subr.bf16.mxu1 %v2870_v29  ;;  %v60_v29 = vld [vmem:[#allocation2 + $0x20] sm:$0xff] }
  0x91   :  { %2630 = vmatpush3.bf16.msra.mxu0 %v2871_v30  ;;  %v2918_v30 = vld [vmem:[#allocation7 + $0x4c8] sm:$0xff]  }
  0x92   :  { %2631 = vmatprep.subr.bf16.mxu0 %v2873_v32  ;;  %2652 = vmatpush3.bf16.msra.mxu1 %v2872_v31  ;;  %v66_v31 = vmul.f32 0.56920207, %v60_v29  ;;  %v72_v32 = vld [vmem:[#allocation5 + $0x20] sm:$0xff] }
  0x93   :  { %2653 = vmatprep.subr.bf16.mxu1 %v2874_v33  ;;  %v78_v33 = vmul.f32 0.95864606, %v72_v32 }
  0x95   :  { %2632 = vmatpush3.bf16.msra.mxu0 %v2875_v34  ;;  %v2919_v34 = vld [vmem:[#allocation7 + $0x408] sm:$0xff]  }
  0x96   :  { %2633 = vmatprep.subr.bf16.mxu0 %v2877_v36  ;;  %2654 = vmatpush3.bf16.msra.mxu1 %v2876_v35  ;;  %v2921_v35 = vld [vmem:[#allocation7 + $0x440] sm:$0xff]   ;;  %v84_v36 = vadd.f32 %v78_v33, %v66_v31 }
  0x97   :  { %2655 = vmatprep.subr.bf16.mxu1 %v2878_v37  ;;  %v2920_v37 = vld [vmem:[#allocation7 + $0x488] sm:$0xff]  }
  0x99   :  { %2634 = vmatpush3.bf16.msra.mxu0 %v2879_v38  ;;  %v2922_v38 = vld [vmem:[#allocation7 + $0x4c0] sm:$0xff]  }
  0x9a   :  { %2635 = vmatprep.subr.bf16.mxu0 %v2881_v40  ;;  %2656 = vmatpush3.bf16.msra.mxu1 %v2880_v39  ;;  %v2923_v39 = vld [vmem:[#allocation7 + $0x400] sm:$0xff]   ;;  %v90_v40 = vadd.f32 -0.28460103, %v84_v36 }
  0x9b   :  { %2657 = vmatprep.subr.bf16.mxu1 %v2882_v41 }
  0x9c   :  { %v179_v41 = vrot.slane %v90_v40, %v3107_v43  ;;  %96 = vst [vmem:[#allocation8 + $0x20] sm:$0xff] %v90_v40 }
  0x9d   :  { %2636 = vmatpush3.bf16.msra.mxu0 %v2883_v42  ;;  %v172_v42 = vcombine.high %v90_v40, %v90_v40 }
  0x9e   :  { %2637 = vmatprep.subr.bf16.mxu0 %v2885_v45  ;;  %2658 = vmatpush3.bf16.msra.mxu1 %v2884_v44  ;;  %v2925_v44 = vld [vmem:[#allocation7 + $0x578] sm:$0xff]   ;;  %v2924_v45 = vld [vmem:[#allocation7 + $0x480] sm:$0xff]   ;;  %v187_v46 = vcombine.high %v179_v41, %v179_v41  ;;  %v246_v49 = vpack.c.bf16 %v179_v41, %v179_v41 }
  0x9f   :  { %2659 = vmatprep.subr.bf16.mxu1 %v2886_v47  ;;  %v186_v47 = vrot.slane %v172_v42, %v3107_v43 }
  0xa0   :  { %v247_v50 = vpack.c.bf16 %v187_v46, %v187_v46 }
  0xa1   :  { %2638 = vmatpush3.bf16.msra.mxu0 %v2887_v51  ;;  %v188_v51 = vcombine.high %v186_v47, %v186_v47  ;;  %v248_v53 = vpack.c.bf16 %v186_v47, %v186_v47 }
  0xa2   :  { %2639 = vmatprep.subr.bf16.mxu0 %v2889_v52  ;;  %2660 = vmatpush3.bf16.msra.mxu1 %v2888_v54  ;;  %v2927_v52 = vld [vmem:[#allocation7 + $0x538] sm:$0xff]   ;;  %v2929_v54 = vld [vmem:[#allocation7 + $0x570] sm:$0xff]  }
  0xa3   :  { %2661 = vmatprep.subr.bf16.mxu1 %v2890_v55  ;;  %v249_v55 = vpack.c.bf16 %v188_v51, %v188_v51 }
  0xa5   :  { %2640 = vmatpush3.bf16.msra.mxu0 %v2891_v56  ;;  %v2928_v56 = vld [vmem:[#allocation7 + $0x5b8] sm:$0xff]  }
  0xa6   :  { %2669 = vmatprep.subr.bf16.mxu0 %v2893_v60  ;;  %2662 = vmatpush3.bf16.msra.mxu1 %v2892_v61  ;;  %v2932_v60 = vld [vmem:[#allocation7 + $0x5b0] sm:$0xff]   ;;  %v2934_v61 = vld [vmem:[#allocation7 + $0x5e8] sm:$0xff]  }
  0xa7   :  { %2691 = vmatprep.subr.bf16.mxu1 %v2894_v0  ;;  %v2936_v0 = vld [vmem:[#allocation7 + $0x5a8] sm:$0xff]  }
  0xa8   :  { %2063 = vmatmul.mubr.bf16.vlgmr.msra.gmra.mxu0 %v242_v1  ;;  %v2938_v1 = vld [vmem:[#allocation7 + $0x5e0] sm:$0xff]  }
  0xa9   :  { %2670 = vmatpush3.bf16.msra.mxu0 %v2895_v2  ;;  %2103 = vmatmul.mubr.bf16.vlgmr.msra.gmra.mxu1 %v244_v6  ;;  %v2939_v2 = vld [vmem:[#allocation7 + $0x520] sm:$0xff]   ;;  %v2943_v6 = vld [vmem:[#allocation7 + $0x518] sm:$0xff]  }
  0xaa   :  { %2671 = vmatprep.subr.bf16.mxu0 %v2897_v7  ;;  %2692 = vmatpush3.bf16.msra.mxu1 %v2896_v5  ;;  %v2942_v5 = vld [vmem:[#allocation7 + $0x5d8] sm:$0xff]   ;;  %v2945_v7 = vld [vmem:[#allocation7 + $0x550] sm:$0xff]  }
  0xab   :  { %2693 = vmatprep.subr.bf16.mxu1 %v2898_v9  ;;  %2142 = vmatprep.mubr.bf16.mxu0 %v247_v50  ;;  %v2946_v9 = vld [vmem:[#allocation7 + $0x5d0] sm:$0xff]  }
  0xac   :  { %2182 = vmatprep.mubr.bf16.mxu1 %v249_v55 }
  0xad   :  { %2672 = vmatpush3.bf16.msra.mxu0 %v2899_v10  ;;  %v2947_v10 = vld [vmem:[#allocation7 + $0x510] sm:$0xff]  }
  0xae   :  { %2673 = vmatprep.subr.bf16.mxu0 %v2901_v12  ;;  %2694 = vmatpush3.bf16.msra.mxu1 %v2900_v11  ;;  %v2949_v11 = vld [vmem:[#allocation7 + $0x548] sm:$0xff]  }
  0xaf   :  { %2695 = vmatprep.subr.bf16.mxu1 %v2902_v13  ;;  %v61_v12 = vld [vmem:[#allocation2 + $0x28] sm:$0xff]  ;;  %v2948_v13 = vld [vmem:[#allocation7 + $0x590] sm:$0xff]  }
  0xb1   :  { %2674 = vmatpush3.bf16.msra.mxu0 %v2903_v14  ;;  %v67_v14 = vmul.f32 0.56920207, %v61_v12 }
  0xb2   :  { %2675 = vmatprep.subr.bf16.mxu0 %v2905_v16  ;;  %2696 = vmatpush3.bf16.msra.mxu1 %v2904_v15  ;;  %v73_v15 = vld [vmem:[#allocation5 + $0x28] sm:$0xff]  ;;  %v2950_v16 = vld [vmem:[#allocation7 + $0x5c8] sm:$0xff]  }
  0xb3   :  { %2697 = vmatprep.subr.bf16.mxu1 %v2906_v17  ;;  %v79_v17 = vmul.f32 0.95864606, %v73_v15 }
  0xb5   :  { %2676 = vmatpush3.bf16.msra.mxu0 %v2907_v18  ;;  %v2951_v18 = vld [vmem:[#allocation7 + $0x508] sm:$0xff]  }
  0xb6   :  { %2677 = vmatprep.subr.bf16.mxu0 %v2909_v20  ;;  %2698 = vmatpush3.bf16.msra.mxu1 %v2908_v19  ;;  %v2953_v19 = vld [vmem:[#allocation7 + $0x540] sm:$0xff]   ;;  %v85_v20 = vadd.f32 %v79_v17, %v67_v14 }
  0xb7   :  { %2699 = vmatprep.subr.bf16.mxu1 %v2910_v21  ;;  %v2952_v21 = vld [vmem:[#allocation7 + $0x588] sm:$0xff]  }
  0xb9   :  { %2678 = vmatpush3.bf16.msra.mxu0 %v2911_v22  ;;  %v2954_v22 = vld [vmem:[#allocation7 + $0x5c0] sm:$0xff]  }
  0xba   :  { %2679 = vmatprep.subr.bf16.mxu0 %v2913_v24  ;;  %2700 = vmatpush3.bf16.msra.mxu1 %v2912_v23  ;;  %v91_v23 = vadd.f32 -0.28460103, %v85_v20  ;;  %v2955_v24 = vld [vmem:[#allocation7 + $0x500] sm:$0xff]  }
  0xbb   :  { %2701 = vmatprep.subr.bf16.mxu1 %v2914_v25 }
  0xbc   :  { %v196_v25 = vrot.slane %v91_v23, %v3107_v43  ;;  %97 = vst [vmem:[#allocation8 + $0x28] sm:$0xff] %v91_v23 }
  0xbd   :  { %2680 = vmatpush3.bf16.msra.mxu0 %v2915_v26  ;;  %v189_v26 = vcombine.high %v91_v23, %v91_v23 }
  0xbe   :  { %2681 = vmatprep.subr.bf16.mxu0 %v2917_v28  ;;  %2702 = vmatpush3.bf16.msra.mxu1 %v2916_v27  ;;  %v2956_v27 = vld [vmem:[#allocation7 + $0x580] sm:$0xff]   ;;  %v204_v28 = vcombine.high %v196_v25, %v196_v25 }
  0xbf   :  { %2703 = vmatprep.subr.bf16.mxu1 %v2918_v30  ;;  %v203_v29 = vrot.slane %v189_v26, %v3107_v43  ;;  %v250_v30 = vpack.c.bf16 %v196_v25, %v196_v25 }
  0xc0   :  { %v251_v31 = vpack.c.bf16 %v204_v28, %v204_v28 }
  0xc1   :  { %2682 = vmatpush3.bf16.msra.mxu0 %v2919_v34  ;;  %v205_v32 = vcombine.high %v203_v29, %v203_v29  ;;  %v252_v33 = vpack.c.bf16 %v203_v29, %v203_v29 }
  0xc2   :  { %2683 = vmatprep.subr.bf16.mxu0 %v2921_v35  ;;  %2704 = vmatpush3.bf16.msra.mxu1 %v2920_v37 }
  0xc3   :  { %2705 = vmatprep.subr.bf16.mxu1 %v2922_v38  ;;  %v253_v34 = vpack.c.bf16 %v205_v32, %v205_v32 }
  0xc5   :  { %2684 = vmatpush3.bf16.msra.mxu0 %v2923_v39 }
  0xc6   :  { %2713 = vmatprep.subr.bf16.mxu0 %v2925_v44  ;;  %2706 = vmatpush3.bf16.msra.mxu1 %v2924_v45 }
  0xc7   :  { %2735 = vmatprep.subr.bf16.mxu1 %v2926_v48 }
  0xc8   :  { %2143 = vmatmul.mubr.bf16.vlgmr.msra.gmra.mxu0 %v246_v49 }
  0xc9   :  { %2714 = vmatpush3.bf16.msra.mxu0 %v2927_v52  ;;  %2183 = vmatmul.mubr.bf16.vlgmr.msra.gmra.mxu1 %v248_v53 }
  0xca   :  { %2715 = vmatprep.subr.bf16.mxu0 %v2929_v54  ;;  %2736 = vmatpush3.bf16.msra.mxu1 %v2928_v56 }
  0xcb   :  { %2737 = vmatprep.subr.bf16.mxu1 %v2930_v57  ;;  %2222 = vmatprep.mubr.bf16.mxu0 %v251_v31 }
  0xcc   :  { %2262 = vmatprep.mubr.bf16.mxu1 %v253_v34 }
  0xcd   :  { %2716 = vmatpush3.bf16.msra.mxu0 %v2931_v58 }
  0xce   :  { %2717 = vmatprep.subr.bf16.mxu0 %v2933_v59  ;;  %2738 = vmatpush3.bf16.msra.mxu1 %v2932_v60 }
  0xcf   :  { %2739 = vmatprep.subr.bf16.mxu1 %v2934_v61 }
  0xd1   :  { %2718 = vmatpush3.bf16.msra.mxu0 %v2935_v62 }
  0xd2   :  { %2719 = vmatprep.subr.bf16.mxu0 %v2937_v63  ;;  %2740 = vmatpush3.bf16.msra.mxu1 %v2936_v0 }
  0xd3   :  { %2741 = vmatprep.subr.bf16.mxu1 %v2938_v1 }
  0xd5   :  { %2720 = vmatpush3.bf16.msra.mxu0 %v2939_v2 }
  0xd6   :  { %2721 = vmatprep.subr.bf16.mxu0 %v2941_v3  ;;  %2742 = vmatpush3.bf16.msra.mxu1 %v2940_v4 }
  0xd7   :  { %2743 = vmatprep.subr.bf16.mxu1 %v2942_v5 }
  0xd9   :  { %2722 = vmatpush3.bf16.msra.mxu0 %v2943_v6 }
  0xda   :  { %2723 = vmatprep.subr.bf16.mxu0 %v2945_v7  ;;  %2744 = vmatpush3.bf16.msra.mxu1 %v2944_v8 }
  0xdb   :  { %2745 = vmatprep.subr.bf16.mxu1 %v2946_v9 }
  0xdd   :  { %2724 = vmatpush3.bf16.msra.mxu0 %v2947_v10 }
  0xde   :  { %2725 = vmatprep.subr.bf16.mxu0 %v2949_v11  ;;  %2746 = vmatpush3.bf16.msra.mxu1 %v2948_v13 }
  0xdf   :  { %2747 = vmatprep.subr.bf16.mxu1 %v2950_v16 }
  0xe1   :  { %2726 = vmatpush3.bf16.msra.mxu0 %v2951_v18 }
  0xe2   :  { %2727 = vmatprep.subr.bf16.mxu0 %v2953_v19  ;;  %2748 = vmatpush3.bf16.msra.mxu1 %v2952_v21 }
  0xe3   :  { %2749 = vmatprep.subr.bf16.mxu1 %v2954_v22 }
  0xe5   :  { %2728 = vmatpush3.bf16.msra.mxu0 %v2955_v24 }
  0xe6   :  { %2750 = vmatpush3.bf16.msra.mxu1 %v2956_v27 }
  0xe8   :  { %2223 = vmatmul.mubr.bf16.vlgmr.msra.gmra.mxu0 %v250_v30 }
  0xe9   :  { %2263 = vmatmul.mubr.bf16.vlgmr.msra.gmra.mxu1 %v252_v33 }
 0x108   :  { %v2509_v35 = vpop.f32.mrf.mxu0 }
 0x109   :  { %v2531_v36 = vpop.f32.mrf.mxu1 }
 0x10a   :  { %v2510_v37 = vpop.f32.mrf.mxu0 }
 0x10b   :  { %v2511_v38 = vadd.f32 %v2510_v37, %v2509_v35  ;;  %v2532_v39 = vpop.f32.mrf.mxu1 }
 0x10c   :  { %v2512_v40 = vpop.f32.mrf.mxu0  ;;  %v2533_v41 = vadd.f32 %v2532_v39, %v2531_v36 }
 0x10d   :  { %v2534_v42 = vpop.f32.mrf.mxu1 }
 0x10e   :  { %v2513_v43 = vpop.f32.mrf.mxu0  ;;  %v1865_v44 = vadd.f32 %v2533_v41, %v2511_v38 }
 0x10f   :  { %v2535_v45 = vpop.f32.mrf.mxu1 }
 0x128   :  { %v2553_v46 = vpop.f32.mrf.mxu0 }
 0x129   :  { %v2575_v47 = vpop.f32.mrf.mxu1 }
 0x12a   :  { %v2554_v48 = vpop.f32.mrf.mxu0 }
 0x12b   :  { %v2555_v49 = vadd.f32 %v2554_v48, %v2553_v46  ;;  %v2576_v50 = vpop.f32.mrf.mxu1 }
 0x12c   :  { %v2556_v51 = vpop.f32.mrf.mxu0  ;;  %v2577_v53 = vadd.f32 %v2576_v50, %v2575_v47 }
 0x12d   :  { %v1905_v52 = vadd.f32 %v2555_v49, %v1865_v44  ;;  %v2578_v54 = vpop.f32.mrf.mxu1 }
 0x12e   :  { %v2557_v55 = vpop.f32.mrf.mxu0 }
 0x12f   :  { %v1945_v56 = vadd.f32 %v2577_v53, %v1905_v52  ;;  %v2579_v57 = vpop.f32.mrf.mxu1 }
 0x130   :  { %3028 = shalt.err (!%p3025_p5)
}
 0x131   :  { %2280 = dma.vmem_to_hbm [thread:$0]  %s2278_s2, 768, %s3130_s3, [#allocation4]  }
 0x132   :  { %s3072_s3 = smov [#allocation9]  }
 0x133   :  { %s2287_s8 = sshll.u32 %s3072_s3, 4  ;;  %s2288_s8 = int_to_ptr.vmem [resolvable:$true] %s2287_s8 }
 0x134   :  { %s3037_s9 = scalar_lea.vmem %s2288_s8, 32  ;;  %p3042_p7 = scmp.lt.s32.totalorder %s2288_s8, %s2288_s8 }
 0x135   :  { %p3038_p6 = scmp.ne.s32.totalorder %s2288_s8, %s3037_s9  ;;  %p3043_p8 = scmp.lt.s32.totalorder %s3037_s9, %s3037_s9 }
 0x137   :  { %p3044_p9 = por %p3043_p8, %p3042_p7 }
 0x139   :  { %p3045_p10 = pnand %p3044_p9, %p3038_p6 }
 0x148   :  { %v2597_v58 = vpop.f32.mrf.mxu0 }
 0x149   :  { %v2619_v59 = vpop.f32.mrf.mxu1 }
 0x14a   :  { %v2598_v60 = vpop.f32.mrf.mxu0 }
 0x14b   :  { %v2599_v61 = vadd.f32 %v2598_v60, %v2597_v58  ;;  %v2620_v62 = vpop.f32.mrf.mxu1 }
 0x14c   :  { %v2600_v63 = vpop.f32.mrf.mxu0  ;;  %v2621_v1 = vadd.f32 %v2620_v62, %v2619_v59 }
 0x14d   :  { %v1985_v0 = vadd.f32 %v2599_v61, %v1945_v56  ;;  %v2622_v2 = vpop.f32.mrf.mxu1 }
 0x14e   :  { %v2601_v3 = vpop.f32.mrf.mxu0 }
 0x14f   :  { %v2025_v4 = vadd.f32 %v2621_v1, %v1985_v0  ;;  %v2623_v5 = vpop.f32.mrf.mxu1 }
 0x168   :  { %v2641_v6 = vpop.f32.mrf.mxu0 }
 0x169   :  { %v2663_v7 = vpop.f32.mrf.mxu1 }
 0x16a   :  { %v2642_v8 = vpop.f32.mrf.mxu0 }
 0x16b   :  { %v2664_v9 = vpop.f32.mrf.mxu1  ;;  %v2643_v22 = vadd.f32 %v2642_v8, %v2641_v6 }
 0x16c   :  { %v2644_v10 = vpop.f32.mrf.mxu0  ;;  %v2665_v24 = vadd.f32 %v2664_v9, %v2663_v7 }
 0x16d   :  { %v2666_v11 = vpop.f32.mrf.mxu1  ;;  %v2065_v23 = vadd.f32 %v2643_v22, %v2025_v4 }
 0x16e   :  { %v2645_v12 = vpop.f32.mrf.mxu0 }
 0x16f   :  { %v2667_v13 = vpop.f32.mrf.mxu1  ;;  %v2105_v26 = vadd.f32 %v2665_v24, %v2065_v23 }
 0x188   :  { %v2685_v14 = vpop.f32.mrf.mxu0 }
 0x189   :  { %v2707_v15 = vpop.f32.mrf.mxu1 }
 0x18a   :  { %v2686_v16 = vpop.f32.mrf.mxu0 }
 0x18b   :  { %v2708_v17 = vpop.f32.mrf.mxu1  ;;  %v2687_v25 = vadd.f32 %v2686_v16, %v2685_v14 }
 0x18c   :  { %v2688_v18 = vpop.f32.mrf.mxu0  ;;  %v2709_v28 = vadd.f32 %v2708_v17, %v2707_v15 }
 0x18d   :  { %v2710_v19 = vpop.f32.mrf.mxu1  ;;  %v2145_v27 = vadd.f32 %v2687_v25, %v2105_v26 }
 0x18e   :  { %v2689_v20 = vpop.f32.mrf.mxu0 }
 0x18f   :  { %v2711_v21 = vpop.f32.mrf.mxu1  ;;  %v2185_v32 = vadd.f32 %v2709_v28, %v2145_v27 }
 0x1a8   :  { %v2729_v29 = vpop.f32.mrf.mxu0 }
 0x1a9   :  { %v2751_v30 = vpop.f32.mrf.mxu1 }
 0x1aa   :  { %v2730_v31 = vpop.f32.mrf.mxu0 }
 0x1ab   :  { %v2731_v33 = vadd.f32 %v2730_v31, %v2729_v29  ;;  %v2752_v34 = vpop.f32.mrf.mxu1 }
 0x1ac   :  { %v2732_v35 = vpop.f32.mrf.mxu0  ;;  %v2753_v37 = vadd.f32 %v2752_v34, %v2751_v30 }
 0x1ad   :  { %v2225_v36 = vadd.f32 %v2731_v33, %v2185_v32  ;;  %v2754_v38 = vpop.f32.mrf.mxu1 }
 0x1ae   :  { %v2733_v39 = vpop.f32.mrf.mxu0 }
 0x1af   :  { %v2265_v40 = vadd.f32 %v2753_v37, %v2225_v36  ;;  %v2755_v41 = vpop.f32.mrf.mxu1 }
 0x1b1   :  { %2270 = vst [vmem:[#allocation9] sm:$0x3] %v2265_v40 }
 0x1b2   :  { %3048 = shalt.err (!%p3045_p10)
}
 0x1b3   :  { %2290 = dma.vmem_to_hbm [thread:$0]  %s2288_s8, 32, %s3131_s4, [#allocation10]  }
 0x1b4   :  { %3061 = dma.done.wait [#allocation4], 768  }
 0x1b5   :  { %3062 = vsyncadd [#allocation4], 4294966528 }
 0x1b6   :  { %3063 = dma.done.wait [#allocation10], 32  }
 0x1b7   :  { %3064 = vsyncadd [#allocation10], 4294967264 }
 0x1b8   :  { %2297 = vsyncpa [#allocation3], 1 }
 0x1b9   :  { %2298 = vsyncpa [#allocation6], 1 }
 0x1ba   :  { %2299 = vsyncpa [#allocation4], 1 }
 0x1bb   :  { %2300 = vsyncpa [#allocation10], 1 }

</bundles_post_ra>
